<compile_context>
chip_gen: v7x
topology: tpu7x:2x2x1
jax: 0.10.0
libtpu: 0.0.40
codegen_flags: <defaults>
</compile_context>

<pallas_src>
import functools

import jax
import jax.numpy as jnp
from jax.experimental import pallas as pl
from jax.experimental.pallas import tpu as pltpu


def _round_up(n, m):
    return ((n + m - 1) // m) * m


# -----------------------------------------------------------------------------
# Packed layouts (all f32, built once in pack_params):
#
# weight slab (rows x PADW), PADW = round_up(4H + Y_PAD, 128):
#   rows [0, in)            cols [0, H)            : fc1.weight^T
#   rows [in, in+H)         cols [0, 4H)           : lstm.weight_ih_l0^T
#   rows [in, in+H)         cols [4H, 4H+2)        : fc2.weight^T (rest of Y block zero)
#   rows [in+H, in+2H)      cols [0, 4H)           : lstm.weight_hh_l0^T (warm slab only)
#
# bias slab (1, PADB):
#   [0, 4H)                 : b_ih + b_hh (pre-summed)
#   [4H, 4H+2)              : fc2.bias    (rest of Y block zero)
#   [4H+Y_PAD, 4H+Y_PAD+H)  : fc1.bias
#
# output slab (1, OUT_W = round_up(2H + 2, 128)):
#   [0, H)=h_new  [H, 2H)=c_new  [2H, 2H+2)=y   (single unmasked lane-dense store)
# -----------------------------------------------------------------------------


def _cold_kernel(x_ref, w_ref, b_ref, out_ref, *, input_size, H):
    """hidden is None: h0 == c0 == 0, so h0 @ w_hh and f * c0 vanish; w_hh is not even DMA'd."""
    G = 4 * H
    y_pad = out_ref.shape[-1] - 2 * H

    x = x_ref[...]                                              # (1, in)
    w1 = w_ref[pl.ds(0, input_size), pl.ds(0, H)]               # (in, H)
    w_ih = w_ref[pl.ds(input_size, H), pl.ds(0, G)]             # (H, 4H)
    w2b = w_ref[pl.ds(input_size, H), pl.ds(G, y_pad)]          # (H, Y_PAD) (cols 2.. are zero)

    bg = b_ref[:, pl.ds(0, G)]                                  # (1, 4H)  = b_ih + b_hh
    b2b = b_ref[:, pl.ds(G, y_pad)]                             # (1, Y_PAD)
    b1 = b_ref[:, pl.ds(G + y_pad, H)]                          # (1, H)

    # fc1 -> ReLU   (Dropout() is identity in eval mode)
    z = jnp.maximum(jnp.dot(x, w1, preferred_element_type=jnp.float32) + b1, 0.0)

    # single-timestep LSTM cell with zero initial state
    gates = jnp.dot(z, w_ih, preferred_element_type=jnp.float32) + bg      # (1, 4H)
    sg = jax.nn.sigmoid(gates)     # one full-width transcendental pass
    th = jnp.tanh(gates)           # one full-width transcendental pass
    i_g = sg[:, 0 * H:1 * H]
    g_g = th[:, 2 * H:3 * H]
    o_g = sg[:, 3 * H:4 * H]
    c_new = i_g * g_g              # f * c0 == 0
    h_new = o_g * jnp.tanh(c_new)

    # fc2 on h[:, -1, :] (seq len is 1) -- computed over the zero-padded Y block
    y_blk = jnp.dot(h_new, w2b, preferred_element_type=jnp.float32) + b2b  # (1, Y_PAD)

    out_ref[...] = jnp.concatenate([h_new, c_new, y_blk], axis=-1)


def _warm_kernel(x_ref, state_ref, w_ref, b_ref, out_ref, *, input_size, H):
    """hidden provided: full LSTM cell update."""
    G = 4 * H
    y_pad = out_ref.shape[-1] - 2 * H

    x = x_ref[...]
    h0 = state_ref[:, pl.ds(0, H)]
    c0 = state_ref[:, pl.ds(H, H)]

    w1 = w_ref[pl.ds(0, input_size), pl.ds(0, H)]
    w_ih = w_ref[pl.ds(input_size, H), pl.ds(0, G)]
    w2b = w_ref[pl.ds(input_size, H), pl.ds(G, y_pad)]
    w_hh = w_ref[pl.ds(input_size + H, H), pl.ds(0, G)]

    bg = b_ref[:, pl.ds(0, G)]
    b2b = b_ref[:, pl.ds(G, y_pad)]
    b1 = b_ref[:, pl.ds(G + y_pad, H)]

    z = jnp.maximum(jnp.dot(x, w1, preferred_element_type=jnp.float32) + b1, 0.0)

    gates = (jnp.dot(z, w_ih, preferred_element_type=jnp.float32)
             + jnp.dot(h0, w_hh, preferred_element_type=jnp.float32)
             + bg)
    sg = jax.nn.sigmoid(gates)
    th = jnp.tanh(gates)
    i_g = sg[:, 0 * H:1 * H]
    f_g = sg[:, 1 * H:2 * H]
    g_g = th[:, 2 * H:3 * H]
    o_g = sg[:, 3 * H:4 * H]
    c_new = f_g * c0 + i_g * g_g
    h_new = o_g * jnp.tanh(c_new)

    y_blk = jnp.dot(h_new, w2b, preferred_element_type=jnp.float32) + b2b

    out_ref[...] = jnp.concatenate([h_new, c_new, y_blk], axis=-1)


# -----------------------------------------------------------------------------
# Parameters
# -----------------------------------------------------------------------------

def init_params(key, input_size, hidden_size):
    """Deterministic PyTorch-style uniform(-1/sqrt(fan_in), 1/sqrt(fan_in)) init."""
    ks = jax.random.split(key, 8)

    def u(k, shape, fan_in):
        bound = 1.0 / (fan_in ** 0.5)
        return jax.random.uniform(k, shape, jnp.float32, -bound, bound)

    H = hidden_size
    return {
        "w1":   u(ks[0], (input_size, H), input_size),   # fc1.weight^T
        "b1":   u(ks[1], (1, H), input_size),            # fc1.bias
        "w_ih": u(ks[2], (H, 4 * H), H),                 # lstm.weight_ih_l0^T
        "w_hh": u(ks[3], (H, 4 * H), H),                 # lstm.weight_hh_l0^T
        "b_ih": u(ks[4], (4 * H,), H),
        "b_hh": u(ks[5], (4 * H,), H),
        "w2":   u(ks[6], (H, 2), H),                     # fc2.weight^T
        "b2":   u(ks[7], (1, 2), H),                     # fc2.bias
    }


def pack_params(params):
    """One-time packing into lane-dense slabs (never call per step)."""
    input_size, H = params["w1"].shape
    G = 4 * H
    out_w = _round_up(2 * H + 2, 128)
    y_pad = out_w - 2 * H
    padw = _round_up(G + y_pad, 128)
    padb = _round_up(G + y_pad + H, 128)

    w1_rows = jnp.pad(params["w1"], ((0, 0), (0, padw - H)))
    ihw2_rows = jnp.concatenate(
        [params["w_ih"],                                   # (H, 4H)
         params["w2"],                                     # (H, 2) -> first cols of Y block
         jnp.zeros((H, padw - G - 2), jnp.float32)], axis=1)
    hh_rows = jnp.pad(params["w_hh"], ((0, 0), (0, padw - G)))

    bias = jnp.concatenate(
        [(params["b_ih"] + params["b_hh"]).reshape(1, G),  # pre-summed LSTM bias
         params["b2"].reshape(1, 2),
         jnp.zeros((1, y_pad - 2), jnp.float32),
         params["b1"].reshape(1, H),
         jnp.zeros((1, padb - G - y_pad - H), jnp.float32)], axis=1)

    return {
        "input_size": input_size,
        "H": H,
        "w_cold": jnp.concatenate([w1_rows, ihw2_rows], axis=0),           # (in+H,  PADW)
        "w_warm": jnp.concatenate([w1_rows, ihw2_rows, hh_rows], axis=0),  # (in+2H, PADW)
        "bias": bias,                                                      # (1, PADB)
    }


# -----------------------------------------------------------------------------
# Wrapper (PyTorch-compatible API: returns (y, (h_n, c_n)))
# -----------------------------------------------------------------------------

def time_action_predict(x, packed, hidden=None):
    """x: (1, input_size) float32.  Returns (y, (h_n, c_n)); h_n/c_n are (1, 1, H)."""
    input_size, H = packed["input_size"], packed["H"]
    out_w = _round_up(2 * H + 2, 128)
    vmem = pl.BlockSpec(memory_space=pltpu.MemorySpace.VMEM)
    out_shape = jax.ShapeDtypeStruct((1, out_w), jnp.float32)
    base_flops = 2 * (input_size * H + H * 4 * H + H * 2)

    if hidden is None:
        kernel = functools.partial(_cold_kernel, input_size=input_size, H=H)
        bytes_accessed = 4 * (x.size + packed["w_cold"].size + packed["bias"].size + out_w)
        out = pl.pallas_call(
            kernel,
            out_shape=out_shape,
            in_specs=[vmem, vmem, vmem],
            out_specs=vmem,
            cost_estimate=pl.CostEstimate(
                flops=base_flops, transcendentals=9 * H, bytes_accessed=bytes_accessed),
        )(x, packed["w_cold"], packed["bias"])
    else:
        h0, c0 = hidden
        state = jnp.concatenate([h0.reshape(1, H), c0.reshape(1, H)], axis=-1)  # (1, 2H)
        kernel = functools.partial(_warm_kernel, input_size=input_size, H=H)
        bytes_accessed = 4 * (x.size + state.size + packed["w_warm"].size
                              + packed["bias"].size + out_w)
        out = pl.pallas_call(
            kernel,
            out_shape=out_shape,
            in_specs=[vmem, vmem, vmem, vmem],
            out_specs=vmem,
            cost_estimate=pl.CostEstimate(
                flops=base_flops + 2 * H * 4 * H, transcendentals=9 * H,
                bytes_accessed=bytes_accessed),
        )(x, state, packed["w_warm"], packed["bias"])

    h_new = out[:, 0:H]
    c_new = out[:, H:2 * H]
    y = out[:, 2 * H:2 * H + 2]
    # PyTorch hidden shapes: (num_layers=1, batch=1, hidden_size)
    return y, (h_new.reshape(1, 1, H), c_new.reshape(1, 1, H))


# -----------------------------------------------------------------------------
# Pure-JAX reference (same math, unpacked params) for validation
# -----------------------------------------------------------------------------

def _reference(x, params, hidden=None):
    H = params["w_hh"].shape[0]
    hp = jax.lax.Precision.HIGHEST
    z = jnp.maximum(jnp.dot(x, params["w1"], precision=hp) + params["b1"], 0.0)
    if hidden is None:
        h0 = jnp.zeros((1, H), jnp.float32)
        c0 = jnp.zeros((1, H), jnp.float32)
    else:
        h0 = hidden[0].reshape(1, H)
        c0 = hidden[1].reshape(1, H)
    gates = (jnp.dot(z, params["w_ih"], precision=hp)
             + jnp.dot(h0, params["w_hh"], precision=hp)
             + (params["b_ih"] + params["b_hh"])[None, :])
    i = jax.nn.sigmoid(gates[:, 0 * H:1 * H])
    f = jax.nn.sigmoid(gates[:, 1 * H:2 * H])
    g = jnp.tanh(gates[:, 2 * H:3 * H])
    o = jax.nn.sigmoid(gates[:, 3 * H:4 * H])
    c = f * c0 + i * g
    h = o * jnp.tanh(c)
    y = jnp.dot(h, params["w2"], precision=hp) + params["b2"]
    return y, (h.reshape(1, 1, H), c.reshape(1, 1, H))


if __name__ == "__main__":
    INPUT_SIZE = 64     # small version of the default 128
    HIDDEN_SIZE = 32    # small version of the default 64

    key = jax.random.PRNGKey(0)
    k_params, k_x0, k_x1 = jax.random.split(key, 3)
    params = init_params(k_params, INPUT_SIZE, HIDDEN_SIZE)
    packed = pack_params(params)   # one-time: slabs + pre-summed LSTM bias

    # The module's x.view(1, 1, -1) feeding LSTM(input_size=hidden_size) implies batch == 1.
    x0 = jax.random.normal(k_x0, (1, INPUT_SIZE), jnp.float32)
    x1 = jax.random.normal(k_x1, (1, INPUT_SIZE), jnp.float32)

    # cold path (hidden is None -> "reset state") and warm path (carry returned (h, c))
    y0, hid0 = time_action_predict(x0, packed, hidden=None)
    y1, hid1 = time_action_predict(x1, packed, hidden=hid0)
    jax.block_until_ready((y0, y1, hid0, hid1))

    # correctness check against the pure-JAX reference
    ry0, rhid0 = _reference(x0, params, hidden=None)
    ry1, rhid1 = _reference(x1, params, hidden=rhid0)
    for got, want in ((y0, ry0), (hid0[0], rhid0[0]), (hid0[1], rhid0[1]),
                      (y1, ry1), (hid1[0], rhid1[0]), (hid1[1], rhid1[1])):
        assert got.shape == want.shape
        assert float(jnp.max(jnp.abs(got - want))) < 1e-2

    assert y0.shape == (1, 2) and y1.shape == (1, 2)
    assert hid1[0].shape == (1, 1, HIDDEN_SIZE) and hid1[1].shape == (1, 1, HIDDEN_SIZE)
    print("KERNEL_OK")
</pallas_src>

<mosaic_0001>
module attributes {stable_mosaic.version = 11 : i64} {
  func.func @_cold_kernel(%arg0: memref<1x64xf32, #tpu.memory_space<vmem>>, %arg1: memref<96x256xf32, #tpu.memory_space<vmem>>, %arg2: memref<1x256xf32, #tpu.memory_space<vmem>>, %arg3: memref<1x128xf32, #tpu.memory_space<vmem>>) attributes {dimension_semantics = [], scalar_prefetch = 0 : i64, scratch_operands = 0 : i64, tpu.core_type = #tpu.core_type<tc>} {
    %c0 = arith.constant 0 : index
    %c0_0 = arith.constant 0 : index
    %0 = vector.load %arg0[%c0, %c0_0] : memref<1x64xf32, #tpu.memory_space<vmem>>, vector<1x64xf32>
    %c0_1 = arith.constant 0 : index
    %c0_2 = arith.constant 0 : index
    %1 = vector.load %arg1[%c0_1, %c0_2] : memref<96x256xf32, #tpu.memory_space<vmem>>, vector<64x32xf32>
    %c64 = arith.constant 64 : index
    %c0_3 = arith.constant 0 : index
    %2 = vector.load %arg1[%c64, %c0_3] : memref<96x256xf32, #tpu.memory_space<vmem>>, vector<32x128xf32>
    %c64_4 = arith.constant 64 : index
    %c128 = arith.constant 128 : index
    %3 = vector.load %arg1[%c64_4, %c128] : memref<96x256xf32, #tpu.memory_space<vmem>>, vector<32x64xf32>
    %c0_5 = arith.constant 0 : index
    %c0_6 = arith.constant 0 : index
    %4 = vector.load %arg2[%c0_5, %c0_6] : memref<1x256xf32, #tpu.memory_space<vmem>>, vector<1x128xf32>
    %c0_7 = arith.constant 0 : index
    %c128_8 = arith.constant 128 : index
    %5 = vector.load %arg2[%c0_7, %c128_8] : memref<1x256xf32, #tpu.memory_space<vmem>>, vector<1x64xf32>
    %c0_9 = arith.constant 0 : index
    %c192 = arith.constant 192 : index
    %6 = vector.load %arg2[%c0_9, %c192] : memref<1x256xf32, #tpu.memory_space<vmem>>, vector<1x32xf32>
    %cst = arith.constant dense<0.000000e+00> : vector<1x32xf32>
    %7 = tpu.matmul %0, %1, %cst {dimension_numbers = #tpu.dot_dimension_numbers<[1], [0], [0], [1], [0, 0, 1, 1], [], []>} : vector<1x64xf32>, vector<64x32xf32>, vector<1x32xf32> -> vector<1x32xf32>
    %8 = arith.addf %7, %6 : vector<1x32xf32>
    %cst_10 = arith.constant 0.000000e+00 : f32
    %9 = vector.broadcast %cst_10 : f32 to vector<1x32xf32>
    %10 = arith.maximumf %8, %9 : vector<1x32xf32>
    %cst_11 = arith.constant dense<0.000000e+00> : vector<1x128xf32>
    %11 = tpu.matmul %10, %2, %cst_11 {dimension_numbers = #tpu.dot_dimension_numbers<[1], [0], [0], [1], [0, 0, 1, 1], [], []>} : vector<1x32xf32>, vector<32x128xf32>, vector<1x128xf32> -> vector<1x128xf32>
    %12 = arith.addf %11, %4 : vector<1x128xf32>
    %13 = arith.negf %12 : vector<1x128xf32>
    %14 = math.exp %13 : vector<1x128xf32>
    %cst_12 = arith.constant 1.000000e+00 : f32
    %15 = vector.broadcast %cst_12 : f32 to vector<1x128xf32>
    %16 = arith.addf %15, %14 : vector<1x128xf32>
    %17 = arith.divf %15, %16 : vector<1x128xf32>
    %18 = math.tanh %12 : vector<1x128xf32>
    %19 = vector.extract_strided_slice %17 {offsets = [0, 0], sizes = [1, 32], strides = [1, 1]} : vector<1x128xf32> to vector<1x32xf32>
    %20 = vector.extract_strided_slice %18 {offsets = [0, 64], sizes = [1, 32], strides = [1, 1]} : vector<1x128xf32> to vector<1x32xf32>
    %21 = vector.extract_strided_slice %17 {offsets = [0, 96], sizes = [1, 32], strides = [1, 1]} : vector<1x128xf32> to vector<1x32xf32>
    %22 = arith.mulf %19, %20 : vector<1x32xf32>
    %23 = math.tanh %22 : vector<1x32xf32>
    %24 = arith.mulf %21, %23 : vector<1x32xf32>
    %cst_13 = arith.constant dense<0.000000e+00> : vector<1x64xf32>
    %25 = tpu.matmul %24, %3, %cst_13 {dimension_numbers = #tpu.dot_dimension_numbers<[1], [0], [0], [1], [0, 0, 1, 1], [], []>} : vector<1x32xf32>, vector<32x64xf32>, vector<1x64xf32> -> vector<1x64xf32>
    %26 = arith.addf %25, %5 : vector<1x64xf32>
    %27 = tpu.concatenate %24, %22, %26 in 1 : vector<1x32xf32>, vector<1x32xf32>, vector<1x64xf32> -> vector<1x128xf32>
    %c0_14 = arith.constant 0 : index
    %c0_15 = arith.constant 0 : index
    %28 = vector.load %arg3[%c0_14, %c0_15] : memref<1x128xf32, #tpu.memory_space<vmem>>, vector<1x128xf32>
    tpu.vector_store %arg3[%c0_14, %c0_15], %27 {strides = array<i32>} : memref<1x128xf32, #tpu.memory_space<vmem>>, vector<1x128xf32>,
    return
  }
}

</mosaic_0001>

<bundles_post_ra>
// kernel: tpu_custom_call.1
= control target key start
LH: loop header
LB: loop body
LE: loop exit
PB: predicated region body
PF: predicated region fallthrough
CT: control target
= control target key end

     0   :  { %8 = vsyncpa [#allocation3], 0  ;;  %s620_s0 = inlined_call_operand.hbm [shape: f32[1,64], index: 0, kind: input, shape index: {}]   ;;  %s621_s1 = inlined_call_operand.hbm [shape: f32[96,256], index: 1, kind: input, shape index: {}]   ;;  %s622_s2 = inlined_call_operand.vmem [shape: f32[1,256], index: 2, kind: input, shape index: {}]   ;;  %s623_s3 = inlined_call_operand.hbm [shape: f32[1,128], index: 3, kind: output, shape index: {}]  }
   0x1   :  { %9 = vsyncpa [#allocation6], 0 }
   0x2   :  { %10 = vsyncpa [#allocation4], 0  ;;  %s517_s12 = smov [#allocation2]   ;;  %s518_s14 = smov [#allocation5]  }
   0x3   :  { %s17_s13 = sshll.u32 %s517_s12, 4  ;;  %s26_s15 = sshll.u32 %s518_s14, 4  ;;  %s18_s13 = int_to_ptr.vmem [resolvable:$true] %s17_s13  ;;  %s548_s15 = int_to_ptr.vmem [resolvable:$true] %s26_s15 }
   0x4   :  { %s445_s18 = scalar_lea.hbm %s620_s0, 16 }
   0x5   :  { %p446_p0 = scmp.ne.s32.totalorder %s620_s0, %s445_s18  ;;  %p449_p1 = scmp.lt.u32.totalorder %s445_s18, %s620_s0 }
   0x7   :  { %p451_p2 = pnand %p449_p1, %p446_p0 }
   0x9   :  { %454 = shalt.err (!%p451_p2)
}
   0xa   :  { %s455_s23 = scalar_lea.vmem %s18_s13, 16  ;;  %s459_s24 = scalar_lea.vmem %s18_s13, 32 }
   0xb   :  { %p456_p3 = scmp.ne.s32.totalorder %s18_s13, %s455_s23  ;;  %p460_p4 = scmp.lt.s32.totalorder %s18_s13, %s18_s13 }
   0xc   :  { %p461_p5 = scmp.lt.s32.totalorder %s459_s24, %s455_s23 }
   0xe   :  { %p462_p6 = por %p461_p5, %p460_p4 }
  0x10   :  { %p463_p7 = pnand %p462_p6, %p456_p3 }
  0x12   :  { %466 = shalt.err (!%p463_p7)
}
  0x13   :  { %20 = dma.hbm_to_vmem [thread:$0]  %s620_s0, 16, %s18_s13, [#allocation3]  }
  0x14   :  { %s467_s29 = scalar_lea.hbm %s621_s1, 3072 }
  0x15   :  { %p468_p8 = scmp.ne.s32.totalorder %s621_s1, %s467_s29  ;;  %p471_p9 = scmp.lt.u32.totalorder %s467_s29, %s621_s1 }
  0x17   :  { %p473_p10 = pnand %p471_p9, %p468_p8 }
  0x19   :  { %476 = shalt.err (!%p473_p10)
}
  0x1a   :  { %s477_s7 = scalar_lea.vmem %s548_s15, 3072  ;;  %p482_p12 = scmp.lt.s32.totalorder %s548_s15, %s548_s15 }
  0x1b   :  { %p478_p11 = scmp.ne.s32.totalorder %s548_s15, %s477_s7  ;;  %p483_p13 = scmp.lt.s32.totalorder %s477_s7, %s477_s7 }
  0x1d   :  { %p484_p0 = por %p483_p13, %p482_p12 }
  0x1f   :  { %p485_p1 = pnand %p484_p0, %p478_p11 }
  0x21   :  { %488 = shalt.err (!%p485_p1)
}
  0x22   :  { %s519_s0 = smov 256   ;;  %s520_s8 = smov 16  }
  0x23   :  { %32 = dma.hbm_to_vmem [thread:$0]  %s621_s1, 3072, %s548_s15, [#allocation6], %s519_s0, %s519_s0, %s520_s8  }
  0x24   :  { %511 = dma.done.wait [#allocation3], 16  }
  0x25   :  { %512 = vsyncadd [#allocation3], 4294967280 }
  0x26   :  { %513 = dma.done.wait [#allocation6], 3072  }
  0x27   :  { %514 = vsyncadd [#allocation6], 4294964224  ;;  %v521_v0 = vmov 0.0|0.0   ;;  %vm522_vm0 = vmmov 0   ;;  %v523_v1 = vmov 0.0   ;;  %v61_v2 = vlaneseq  ;;  %v42_v4 = vld [vmem:[#allocation5] sm:$0xff] }
  0x28   :  { %402 = vmatprep.subr.bf16.mxu0 %v521_v0  ;;  %377 = vmatprep.mubr.msk.f32.mxu0 %vm522_vm0, %v523_v1  ;;  %v43_v5 = vld [vmem:[#allocation5 + $0x10] sm:$0xff]  ;;  %v44_v6 = vld [vmem:[#allocation5 + $0x20] sm:$0xff]  ;;  %s524_s12 = smov 64   ;;  %v41_v22 = vld [vmem:[#allocation2] sm:$0x1]  ;;  %vm68_vm1 = vcmask 523264  }
  0x29   :  { %414 = vmatprep.subr.bf16.mxu1 %v521_v0  ;;  %388 = vmatprep.mubr.msk.f32.mxu1 %vm522_vm0, %v523_v1  ;;  %v62_v3 = vshrl.u32 %v61_v2, 7  ;;  %v403_v8 = vpack.c.bf16 %v43_v5, %v42_v4  ;;  %v45_v9 = vld [vmem:[#allocation5 + $0x30] sm:$0xff]  ;;  %v50_v12 = vld [vmem:[#allocation5 + $0x80] sm:$0xff]  ;;  %vm143_vm2 = vcmask 261120   ;;  %s525_s15 = smov 32   ;;  %v54_v42 = vld [vmem:[#allocation5 + $0x88] sm:$0xff] }
  0x2a   :  { %v406_v10 = vpack.c.bf16 %v45_v9, %v44_v6  ;;  %v586_v11 = vld [vmem:[%s622_s2 + $0x1] sm:$0x1]  ;;  %v46_v14 = vld [vmem:[#allocation5 + $0x40] sm:$0xff]  ;;  %v58_v31 = vld [vmem:[%s622_s2] sm:$0x1]  ;;  %s526_s2 = smov 96  }
  0x2b   :  { %v63_v7 = vsub.s32 0, %v62_v3  ;;  %404 = vmatpush3.bf16.msra.mxu0 %v403_v8  ;;  %v51_v13 = vld [vmem:[#allocation5 + $0x90] sm:$0xff]  ;;  %v48_v19 = vld [vmem:[#allocation5 + $0x60] sm:$0xff]  ;;  %v55_v43 = vld [vmem:[#allocation5 + $0x98] sm:$0xff]  ;;  %s527_s16 = smov [#allocation7]  }
  0x2c   :  { %405 = vmatprep.subr.bf16.mxu0 %v521_v0  ;;  %v47_v15 = vld [vmem:[#allocation5 + $0x50] sm:$0xff]  ;;  %v415_v17 = vpack.c.bf16 %v51_v13, %v50_v12  ;;  %v52_v23 = vld [vmem:[#allocation5 + $0xa0] sm:$0xff]  ;;  %v56_v44 = vld [vmem:[#allocation5 + $0xa8] sm:$0xff]  ;;  %v421_v45 = vpack.c.bf16 %v55_v43, %v54_v42  ;;  %s328_s17 = sshll.u32 %s527_s16, 4  ;;  %s329_s17 = int_to_ptr.vmem [resolvable:$true] %s328_s17 }
  0x2d   :  { %v64_v16 = vrot.slane %v586_v11, %v63_v7  ;;  %v409_v18 = vpack.c.bf16 %v47_v15, %v46_v14  ;;  %v49_v20 = vld [vmem:[#allocation5 + $0x70] sm:$0xff]  ;;  %v57_v46 = vld [vmem:[#allocation5 + $0xb8] sm:$0xff]  ;;  %s489_s18 = scalar_lea.vmem %s329_s17, 16  ;;  %s493_s19 = scalar_lea.vmem %s329_s17, 32 }
  0x2e   :  { %416 = vmatpush3.bf16.msra.mxu1 %v415_v17  ;;  %v412_v21 = vpack.c.bf16 %v49_v20, %v48_v19  ;;  %v53_v24 = vld [vmem:[#allocation5 + $0xb0] sm:$0xff]  ;;  %v424_v47 = vpack.c.bf16 %v57_v46, %v56_v44  ;;  %p490_p2 = scmp.ne.s32.totalorder %s329_s17, %s489_s18  ;;  %p494_p3 = scmp.lt.s32.totalorder %s329_s17, %s329_s17 }
  0x2f   :  { %65 = vrot.lane.b32.xlu0 %v64_v16, %s524_s12  ;;  %407 = vmatpush3.bf16.msra.mxu0 %v406_v10  ;;  %v418_v25 = vpack.c.bf16 %v53_v24, %v52_v23  ;;  %p495_p4 = scmp.lt.s32.totalorder %s493_s19, %s489_s18 }
  0x30   :  { %417 = vmatprep.subr.bf16.mxu1 %v521_v0  ;;  %408 = vmatprep.subr.bf16.mxu0 %v521_v0 }
  0x31   :  { %p496_p5 = por %p495_p4, %p494_p3 }
  0x32   :  { %419 = vmatpush3.bf16.msra.mxu1 %v418_v25 }
  0x33   :  { %410 = vmatpush3.bf16.msra.mxu0 %v409_v18  ;;  %420 = vmatprep.subr.bf16.mxu1 %v521_v0  ;;  %p497_p6 = pnand %p496_p5, %p490_p2 }
  0x34   :  { %411 = vmatprep.subr.bf16.mxu0 %v521_v0 }
  0x37   :  { %413 = vmatpush3.bf16.msra.mxu0 %v412_v21 }
  0x3a   :  { %378 = vmatmul.mubr.msk.f32.vlgmr.msra.gmra.mrb[0].mxu0 %vm68_vm1, %v41_v22 }
  0xa1   :  { %v66_v26 = vpop.permute.xlu0 %65 }
 0x10d   :  { %v138_v27 = vpop.f32.mrb[0].mxu0 }
 0x10e   :  { %v139_v28 = vadd.f32 %v138_v27, %v66_v26  ;;  %v379_v29 = vpop.f32.mrb[1].mxu0 }
 0x110   :  { %v142_v30 = vmax.f32 %v139_v28, 0.0 }
 0x112   :  { %389 = vmatmul.mubr.msk.f32.vlgmr.msra.gmra.mrb[0].mxu1 %vm143_vm2, %v142_v30 }
 0x113   :  { %399 = vmatprep.mubr.msk.f32.mxu1 %vm522_vm0, %v523_v1  ;;  %422 = vmatpush3.bf16.msra.mxu1 %v421_v45 }
 0x114   :  { %423 = vmatprep.subr.bf16.mxu1 %v521_v0 }
 0x117   :  { %425 = vmatpush3.bf16.msra.mxu1 %v424_v47 }
 0x1e5   :  { %v213_v32 = vpop.f32.mrb[0].mxu1 }
 0x1e6   :  { %v214_v33 = vadd.f32 %v213_v32, %v58_v31  ;;  %v390_v34 = vpop.f32.mrb[1].mxu1 }
 0x1e8   :  { %437 = vtanh.f32 %v214_v33  ;;  %v340_v36 = vmul.f32 -1.442695, %v214_v33 }
 0x1ea   :  { %439 = vpow2.f32 %v340_v36 }
 0x1f2   :  { %v438_v35 = vpop.eup %437 }
 0x1f3   :  { %225 = vrot.lane.b32.xlu0 %v438_v35, %s524_s12 }
 0x1f4   :  { %v440_v37 = vpop.eup %439 }
 0x1f5   :  { %v220_v38 = vadd.f32 1.0, %v440_v37 }
 0x1f7   :  { %441 = vrcp.f32 %v220_v38 }
 0x201   :  { %v442_v39 = vpop.eup %441 }
 0x265   :  { %v226_v40 = vpop.permute.xlu0 %225 }
 0x266   :  { %v228_v41 = vmul.f32 %v442_v39, %v226_v40 }
 0x268   :  { %443 = vtanh.f32 %v228_v41  ;;  %312 = vrot.lane.b32.xlu0 %v228_v41, %s525_s15 }
 0x272   :  { %v444_v48 = vpop.eup %443 }
 0x273   :  { %231 = vrot.lane.b32.xlu1 %v444_v48, %s526_s2 }
 0x2da   :  { %v313_v55 = vpop.permute.xlu0 %312 }
 0x2e5   :  { %v232_v49 = vpop.permute.xlu1 %231 }
 0x2e6   :  { %v234_v50 = vmul.f32 %v442_v39, %v232_v49 }
 0x2e8   :  { %236 = vrot.lane.b32.xlu1 %v234_v50, %s525_s15 }
 0x35a   :  { %v237_v51 = vpop.permute.xlu1 %236 }
 0x35b   :  { %400 = vmatmul.mubr.msk.f32.vlgmr.msra.gmra.mrb[2].mxu1 %vm143_vm2, %v237_v51  ;;  %v319_v56 = vsel %vm143_vm2, %v237_v51, %v313_v55 }
 0x42e   :  { %v306_v52 = vpop.f32.mrb[2].mxu1 }
 0x42f   :  { %v307_v53 = vadd.f32 %v306_v52, %v586_v11  ;;  %v401_v54 = vpop.f32.mrb[3].mxu1 }
 0x431   :  { %316 = vrot.lane.b32.xlu1 %v307_v53, %s524_s12 }
 0x4a3   :  { %v317_v57 = vpop.permute.xlu1 %316 }
 0x4a4   :  { %v320_v58 = vsel %vm68_vm1, %v319_v56, %v317_v57 }
 0x4a5   :  { %321 = vst [vmem:[#allocation7] sm:$0x1] %v320_v58 }
 0x4a6   :  { %500 = shalt.err (!%p497_p6)
}
 0x4a7   :  { %s501_s22 = scalar_lea.hbm %s623_s3, 16 }
 0x4a8   :  { %p502_p7 = scmp.ne.s32.totalorder %s623_s3, %s501_s22  ;;  %p505_p8 = scmp.lt.u32.totalorder %s501_s22, %s623_s3 }
 0x4aa   :  { %p507_p9 = pnand %p505_p8, %p502_p7 }
 0x4ac   :  { %510 = shalt.err (!%p507_p9)
}
 0x4ad   :  { %331 = dma.vmem_to_hbm [thread:$0]  %s329_s17, 16, %s623_s3, [#allocation4]  }
 0x4ae   :  { %515 = dma.done.wait [#allocation4], 16  }
 0x4af   :  { %516 = vsyncadd [#allocation4], 4294967280 }
 0x4b0   :  { %335 = vsyncpa [#allocation3], 1 }
 0x4b1   :  { %336 = vsyncpa [#allocation6], 1 }
 0x4b2   :  { %337 = vsyncpa [#allocation4], 1 }

</bundles_post_ra>
